<compile_context>
chip_gen: v7x
topology: tpu7x:2x2x1
jax: 0.10.0
libtpu: 0.0.40
codegen_flags: <defaults>
</compile_context>

<pallas_src>
import functools

import jax
import jax.numpy as jnp
from jax.experimental import pallas as pl
from jax.experimental.pallas import tpu as pltpu


def _round_up(a, b):
    return (a + b - 1) // b * b


def _ffn_kernel(x_ref, w1_ref, b1_ref, w2_ref, b2_ref, o_ref, acc_ref, *,
                approximate_gelu):
    """One (tile_m, tile_h) step of  out = GELU(x @ W1 + b1) @ W2 + b2."""
    h_idx = pl.program_id(1)

    @pl.when(h_idx == 0)
    def _():
        acc_ref[...] = jnp.zeros_like(acc_ref)

    # First linear on the MXU (bf16 in, f32 accumulation), bias add in f32.
    h = jnp.dot(x_ref[...], w1_ref[...], preferred_element_type=jnp.float32)
    h = h + b1_ref[...]                                    # (tile_m, tile_h) f32

    if approximate_gelu:
        # tanh-GELU: the transcendental goes to the EUP slot -> essentially
        # free behind the two MXU passes on all generations.
        h = jax.nn.gelu(h, approximate=True)
    else:
        # Exact erf-GELU (torch.nn.GELU() default).  NOTE: lax.erf lowers to a
        # ~20-op f32 polynomial on the 4-wide VALU slot over the whole
        # intermediate; flip approximate_gelu=True when model parity allows.
        h = 0.5 * h * (1.0 + jax.lax.erf(h * (1.0 / jnp.sqrt(2.0))))

    # Second linear: feed the MXU in bf16 again, accumulate in f32 scratch.
    acc_ref[...] += jnp.dot(h.astype(w2_ref.dtype), w2_ref[...],
                            preferred_element_type=jnp.float32)

    @pl.when(h_idx == pl.num_programs(1) - 1)
    def _():
        o_ref[...] = (acc_ref[...] + b2_ref[...]).astype(o_ref.dtype)


def _vmem_footprint(tile_m, tile_h, dim_p, cbytes, obytes, resident_weights):
    """Approximate VMEM bytes used by one kernel instance."""
    wbuf = 1 if resident_weights else 2          # pipeline buffers for W1/b1/W2
    return (
        2 * tile_m * dim_p * cbytes              # x tile (double buffered)
        + 2 * tile_m * dim_p * obytes            # out tile (double buffered)
        + wbuf * dim_p * tile_h * cbytes         # W1 slice
        + wbuf * tile_h * dim_p * cbytes         # W2 slice
        + wbuf * tile_h * 4                      # b1 slice (f32)
        + dim_p * 4                              # b2 (f32, single buffer)
        + tile_m * dim_p * 4                     # f32 accumulator scratch
        + tile_m * tile_h * 4                    # f32 intermediate h
        + tile_m * tile_h * cbytes               # bf16 re-cast of h
    )


@functools.partial(
    jax.jit, static_argnames=("tile_m", "compute_dtype", "approximate_gelu")
)
def feed_forward(x, w1, b1, w2, b2, *, tile_m=512,
                 compute_dtype=jnp.bfloat16, approximate_gelu=False):
    """x: (batch, seq, dim); w1: (dim, hidden); b1: (hidden,);
    w2: (hidden, dim); b2: (dim,). Returns (batch, seq, dim) in x.dtype."""
    batch, seq, dim = x.shape
    hidden = w1.shape[1]
    out_dtype = x.dtype

    m = batch * seq
    cbytes = jnp.dtype(compute_dtype).itemsize
    obytes = jnp.dtype(out_dtype).itemsize

    dim_p = _round_up(dim, 128)                  # lane-dense last dims
    hid_p = _round_up(hidden, 128)

    # ---- generation-aware VMEM budget ----
    try:
        vmem_cap = int(pltpu.get_tpu_info().vmem_capacity_bytes)
    except Exception:
        vmem_cap = 64 * 1024 * 1024              # conservative: v7x per-TC VMEM
    budget = int(0.80 * vmem_cap)                # headroom for Mosaic scratch

    # ---- tile selection: shrink hidden tile first (weights dominate VMEM),
    #      then the M tile if still over budget ----
    tile_m_eff = _round_up(min(tile_m, _round_up(m, 8)), 8)
    tile_h = hid_p
    while (_vmem_footprint(tile_m_eff, tile_h, dim_p, cbytes, obytes,
                           tile_h == hid_p) > budget and tile_h > 512):
        tile_h = _round_up(max(512, tile_h // 2), 128)
    while (_vmem_footprint(tile_m_eff, tile_h, dim_p, cbytes, obytes,
                           tile_h == hid_p) > budget and tile_m_eff > 64):
        tile_m_eff = _round_up(max(64, tile_m_eff // 2), 8)

    hid_p = _round_up(hid_p, tile_h)             # make tile_h divide hid_p
    n_h = hid_p // tile_h
    resident = (n_h == 1)

    m_p = _round_up(m, tile_m_eff)
    n_m = m_p // tile_m_eff

    # ---- pad + cast operands (zero padding is exact: GELU(0)=0, zero
    #      weight rows/cols contribute nothing, padded rows are sliced off) ----
    x2d = x.reshape(m, dim)
    if (m_p, dim_p) != (m, dim):
        x2d = jnp.pad(x2d, ((0, m_p - m), (0, dim_p - dim)))
    w1_p = (jnp.pad(w1, ((0, dim_p - dim), (0, hid_p - hidden)))
            if (dim_p, hid_p) != (dim, hidden) else w1)
    w2_p = (jnp.pad(w2, ((0, hid_p - hidden), (0, dim_p - dim)))
            if (dim_p, hid_p) != (dim, hidden) else w2)
    b1_p = jnp.pad(b1, (0, hid_p - hidden)) if hid_p != hidden else b1
    b2_p = jnp.pad(b2, (0, dim_p - dim)) if dim_p != dim else b2

    x2d = x2d.astype(compute_dtype)
    w1_p = w1_p.astype(compute_dtype)
    w2_p = w2_p.astype(compute_dtype)
    b1_2d = b1_p.reshape(1, hid_p).astype(jnp.float32)   # biases stay f32
    b2_2d = b2_p.reshape(1, dim_p).astype(jnp.float32)

    # ---- VMEM limit: always set explicitly, capped below physical VMEM ----
    footprint = _vmem_footprint(tile_m_eff, tile_h, dim_p, cbytes, obytes,
                                resident)
    vmem_limit_bytes = int(min(vmem_cap,
                               max(footprint * 1.25 + (2 << 20), 16 << 20)))

    # ---- BlockSpecs.  Constant-index blocks are single-buffered. ----
    res_kw = dict(pipeline_mode=pl.Buffered(1)) if resident else {}
    in_specs = [
        pl.BlockSpec((tile_m_eff, dim_p), lambda i, h: (i, 0)),            # x
        pl.BlockSpec((dim_p, tile_h), lambda i, h: (0, h), **res_kw),      # W1
        pl.BlockSpec((1, tile_h), lambda i, h: (0, h), **res_kw),          # b1
        pl.BlockSpec((tile_h, dim_p), lambda i, h: (h, 0), **res_kw),      # W2
        pl.BlockSpec((1, dim_p), lambda i, h: (0, 0),
                     pipeline_mode=pl.Buffered(1)),                        # b2
    ]
    out_spec = pl.BlockSpec((tile_m_eff, dim_p), lambda i, h: (i, 0))

    weight_passes = 1 if resident else n_m
    cost = pl.CostEstimate(
        flops=4 * m_p * dim_p * hid_p,                     # two matmuls
        transcendentals=m_p * hid_p,                       # erf / tanh
        bytes_accessed=(
            m_p * dim_p * cbytes                           # x
            + weight_passes * 2 * dim_p * hid_p * cbytes   # W1 + W2 (re-streamed)
            + (hid_p + dim_p) * 4                          # biases
            + m_p * dim_p * obytes                         # out
        ),
    )

    kernel = functools.partial(_ffn_kernel, approximate_gelu=approximate_gelu)

    out2d = pl.pallas_call(
        kernel,
        out_shape=jax.ShapeDtypeStruct((m_p, dim_p), out_dtype),
        grid_spec=pltpu.PrefetchScalarGridSpec(
            num_scalar_prefetch=0,
            grid=(n_m, n_h),                               # hidden axis last
            in_specs=in_specs,
            out_specs=out_spec,
            scratch_shapes=[pltpu.VMEM((tile_m_eff, dim_p), jnp.float32)],
        ),
        compiler_params=pltpu.CompilerParams(
            dimension_semantics=("parallel", "arbitrary"),
            vmem_limit_bytes=vmem_limit_bytes,
        ),
        cost_estimate=cost,
    )(x2d, w1_p, b1_2d, w2_p, b2_2d)

    if (m_p, dim_p) != (m, dim):
        out2d = out2d[:m, :dim]
    return out2d.reshape(batch, seq, dim)


def _reference(x, w1, b1, w2, b2, compute_dtype=jnp.float32):
    xc, w1c, w2c = (a.astype(compute_dtype) for a in (x, w1, w2))
    h = jnp.einsum("bsd,dh->bsh", xc, w1c,
                   preferred_element_type=jnp.float32) + b1.astype(jnp.float32)
    h = 0.5 * h * (1.0 + jax.lax.erf(h * (1.0 / jnp.sqrt(2.0))))
    h = h.astype(compute_dtype)
    o = jnp.einsum("bsh,hd->bsd", h, w2c,
                   preferred_element_type=jnp.float32) + b2.astype(jnp.float32)
    return o.astype(x.dtype)


def _make_inputs(key, batch, seq, dim, hidden):
    kx, kw1, kb1, kw2, kb2 = jax.random.split(key, 5)
    x = jax.random.normal(kx, (batch, seq, dim), dtype=jnp.float32)
    # Deterministic init mimicking nn.Linear's uniform(-1/sqrt(fan_in), ...).
    lim1 = 1.0 / jnp.sqrt(dim)
    lim2 = 1.0 / jnp.sqrt(hidden)
    w1 = jax.random.uniform(kw1, (dim, hidden), jnp.float32, -lim1, lim1)
    b1 = jax.random.uniform(kb1, (hidden,), jnp.float32, -lim1, lim1)
    w2 = jax.random.uniform(kw2, (hidden, dim), jnp.float32, -lim2, lim2)
    b2 = jax.random.uniform(kb2, (dim,), jnp.float32, -lim2, lim2)
    return x, w1, b1, w2, b2


if __name__ == "__main__":
    key = jax.random.PRNGKey(0)
    k1, k2 = jax.random.split(key)

    # Case 1: lane-aligned shapes (no padding path).
    x, w1, b1, w2, b2 = _make_inputs(k1, batch=2, seq=8, dim=128, hidden=256)
    out = jax.block_until_ready(feed_forward(x, w1, b1, w2, b2))
    assert out.shape == (2, 8, 128)
    ref_bf16 = _reference(x, w1, b1, w2, b2, compute_dtype=jnp.bfloat16)
    ref_f32 = _reference(x, w1, b1, w2, b2, compute_dtype=jnp.float32)
    assert jnp.allclose(out, ref_bf16, atol=2e-3, rtol=2e-3), "case1 vs bf16 ref"
    assert jnp.allclose(out, ref_f32, atol=6e-2, rtol=6e-2), "case1 vs f32 ref"

    # Case 2: ragged shapes (exercises the padding / slicing path).
    x, w1, b1, w2, b2 = _make_inputs(k2, batch=1, seq=5, dim=96, hidden=200)
    out = jax.block_until_ready(feed_forward(x, w1, b1, w2, b2))
    assert out.shape == (1, 5, 96)
    ref_bf16 = _reference(x, w1, b1, w2, b2, compute_dtype=jnp.bfloat16)
    ref_f32 = _reference(x, w1, b1, w2, b2, compute_dtype=jnp.float32)
    assert jnp.allclose(out, ref_bf16, atol=2e-3, rtol=2e-3), "case2 vs bf16 ref"
    assert jnp.allclose(out, ref_f32, atol=6e-2, rtol=6e-2), "case2 vs f32 ref"

    print("KERNEL_OK")
</pallas_src>

<mosaic_0001>
module attributes {stable_mosaic.version = 11 : i64} {
  func.func @_ffn_kernel(%arg0: i32, %arg1: i32, %arg2: memref<16x128xbf16, #tpu.memory_space<vmem>>, %arg3: memref<128x256xbf16, #tpu.memory_space<vmem>>, %arg4: memref<1x256xf32, #tpu.memory_space<vmem>>, %arg5: memref<256x128xbf16, #tpu.memory_space<vmem>>, %arg6: memref<1x128xf32, #tpu.memory_space<vmem>>, %arg7: memref<16x128xf32, #tpu.memory_space<vmem>>, %arg8: memref<16x128xf32, #tpu.memory_space<vmem>>) attributes {dimension_semantics = [#tpu.dimension_semantics<parallel>, #tpu.dimension_semantics<arbitrary>], iteration_bounds = array<i64: 1, 1>, scalar_prefetch = 0 : i64, scratch_operands = 1 : i64, tpu.core_type = #tpu.core_type<tc>, window_params = [{transform_indices = @transform_0, window_bounds = array<i64: 16, 128>}, {pipeline_mode = #tpu.pipeline_mode<synchronous>, transform_indices = @transform_1, window_bounds = array<i64: 128, 256>}, {pipeline_mode = #tpu.pipeline_mode<synchronous>, transform_indices = @transform_2, window_bounds = array<i64: 1, 256>}, {pipeline_mode = #tpu.pipeline_mode<synchronous>, transform_indices = @transform_3, window_bounds = array<i64: 256, 128>}, {pipeline_mode = #tpu.pipeline_mode<synchronous>, transform_indices = @transform_4, window_bounds = array<i64: 1, 128>}, {transform_indices = @transform_5, window_bounds = array<i64: 16, 128>}]} {
    %c0_i32 = arith.constant 0 : i32
    %0 = arith.cmpi eq, %arg1, %c0_i32 : i32
    %1 = arith.extui %0 : i1 to i32
    %c0_i32_0 = arith.constant 0 : i32
    %2 = arith.cmpi ne, %1, %c0_i32_0 : i32
    scf.if %2 {
      %cst_19 = arith.constant 0.000000e+00 : f32
      %28 = vector.broadcast %cst_19 : f32 to vector<16x128xf32>
      %c0_20 = arith.constant 0 : index
      %c0_21 = arith.constant 0 : index
      %29 = vector.load %arg8[%c0_20, %c0_21] : memref<16x128xf32, #tpu.memory_space<vmem>>, vector<16x128xf32>
      tpu.vector_store %arg8[%c0_20, %c0_21], %28 {strides = array<i32>} : memref<16x128xf32, #tpu.memory_space<vmem>>, vector<16x128xf32>,
    } else {
    }
    %c0 = arith.constant 0 : index
    %c0_1 = arith.constant 0 : index
    %3 = vector.load %arg2[%c0, %c0_1] : memref<16x128xbf16, #tpu.memory_space<vmem>>, vector<16x128xbf16>
    %c0_2 = arith.constant 0 : index
    %c0_3 = arith.constant 0 : index
    %4 = vector.load %arg3[%c0_2, %c0_3] : memref<128x256xbf16, #tpu.memory_space<vmem>>, vector<128x256xbf16>
    %cst = arith.constant dense<0.000000e+00> : vector<16x256xf32>
    %5 = tpu.matmul %3, %4, %cst {dimension_numbers = #tpu.dot_dimension_numbers<[1], [0], [0], [1], [0, 0, 1, 1], [], []>} : vector<16x128xbf16>, vector<128x256xbf16>, vector<16x256xf32> -> vector<16x256xf32>
    %c0_4 = arith.constant 0 : index
    %c0_5 = arith.constant 0 : index
    %6 = vector.load %arg4[%c0_4, %c0_5] : memref<1x256xf32, #tpu.memory_space<vmem>>, vector<1x256xf32>
    %7 = vector.broadcast %6 : vector<1x256xf32> to vector<16x256xf32>
    %8 = arith.addf %5, %7 : vector<16x256xf32>
    %cst_6 = arith.constant 5.000000e-01 : f32
    %9 = vector.broadcast %cst_6 : f32 to vector<16x256xf32>
    %10 = arith.mulf %9, %8 : vector<16x256xf32>
    %cst_7 = arith.constant 2.000000e+00 : f32
    %11 = math.sqrt %cst_7 : f32
    %cst_8 = arith.constant 1.000000e+00 : f32
    %12 = arith.divf %cst_8, %11 : f32
    %13 = vector.broadcast %12 : f32 to vector<16x256xf32>
    %14 = arith.mulf %8, %13 : vector<16x256xf32>
    %15 = math.erf %14 : vector<16x256xf32>
    %cst_9 = arith.constant 1.000000e+00 : f32
    %16 = vector.broadcast %cst_9 : f32 to vector<16x256xf32>
    %17 = arith.addf %16, %15 : vector<16x256xf32>
    %18 = arith.mulf %10, %17 : vector<16x256xf32>
    %c0_10 = arith.constant 0 : index
    %c0_11 = arith.constant 0 : index
    %19 = vector.load %arg8[%c0_10, %c0_11] : memref<16x128xf32, #tpu.memory_space<vmem>>, vector<16x128xf32>
    %20 = arith.truncf %18 : vector<16x256xf32> to vector<16x256xbf16>
    %c0_12 = arith.constant 0 : index
    %c0_13 = arith.constant 0 : index
    %21 = vector.load %arg5[%c0_12, %c0_13] : memref<256x128xbf16, #tpu.memory_space<vmem>>, vector<256x128xbf16>
    %cst_14 = arith.constant dense<0.000000e+00> : vector<16x128xf32>
    %22 = tpu.matmul %20, %21, %cst_14 {dimension_numbers = #tpu.dot_dimension_numbers<[1], [0], [0], [1], [0, 0, 1, 1], [], []>} : vector<16x256xbf16>, vector<256x128xbf16>, vector<16x128xf32> -> vector<16x128xf32>
    %23 = arith.addf %19, %22 : vector<16x128xf32>
    %c0_15 = arith.constant 0 : index
    %c0_16 = arith.constant 0 : index
    %24 = vector.load %arg8[%c0_15, %c0_16] : memref<16x128xf32, #tpu.memory_space<vmem>>, vector<16x128xf32>
    tpu.vector_store %arg8[%c0_15, %c0_16], %23 {strides = array<i32>} : memref<16x128xf32, #tpu.memory_space<vmem>>, vector<16x128xf32>,
    %c0_i32_17 = arith.constant 0 : i32
    %25 = arith.cmpi eq, %arg1, %c0_i32_17 : i32
    %26 = arith.extui %25 : i1 to i32
    %c0_i32_18 = arith.constant 0 : i32
    %27 = arith.cmpi ne, %26, %c0_i32_18 : i32
    scf.if %27 {
      %c0_19 = arith.constant 0 : index
      %c0_20 = arith.constant 0 : index
      %28 = vector.load %arg8[%c0_19, %c0_20] : memref<16x128xf32, #tpu.memory_space<vmem>>, vector<16x128xf32>
      %c0_21 = arith.constant 0 : index
      %c0_22 = arith.constant 0 : index
      %29 = vector.load %arg6[%c0_21, %c0_22] : memref<1x128xf32, #tpu.memory_space<vmem>>, vector<1x128xf32>
      %30 = vector.broadcast %29 : vector<1x128xf32> to vector<16x128xf32>
      %31 = arith.addf %28, %30 : vector<16x128xf32>
      %c0_23 = arith.constant 0 : index
      %c0_24 = arith.constant 0 : index
      %32 = vector.load %arg7[%c0_23, %c0_24] : memref<16x128xf32, #tpu.memory_space<vmem>>, vector<16x128xf32>
      tpu.vector_store %arg7[%c0_23, %c0_24], %31 {strides = array<i32>} : memref<16x128xf32, #tpu.memory_space<vmem>>, vector<16x128xf32>,
    } else {
    }
    return
  }
  func.func @transform_0(%arg0: i32, %arg1: i32) -> (i32, i32) {
    %c0_i32 = arith.constant 0 : i32
    %c0_i32_0 = arith.constant 0 : i32
    return %arg0, %c0_i32 : i32, i32
  }
  func.func @transform_1(%arg0: i32, %arg1: i32) -> (i32, i32) {
    %c0_i32 = arith.constant 0 : i32
    %c0_i32_0 = arith.constant 0 : i32
    return %c0_i32, %arg1 : i32, i32
  }
  func.func @transform_2(%arg0: i32, %arg1: i32) -> (i32, i32) {
    %c0_i32 = arith.constant 0 : i32
    %c0_i32_0 = arith.constant 0 : i32
    return %c0_i32, %arg1 : i32, i32
  }
  func.func @transform_3(%arg0: i32, %arg1: i32) -> (i32, i32) {
    %c0_i32 = arith.constant 0 : i32
    %c0_i32_0 = arith.constant 0 : i32
    return %arg1, %c0_i32 : i32, i32
  }
  func.func @transform_4(%arg0: i32, %arg1: i32) -> (i32, i32) {
    %c0_i32 = arith.constant 0 : i32
    %c0_i32_0 = arith.constant 0 : i32
    %c0_i32_1 = arith.constant 0 : i32
    return %c0_i32, %c0_i32_0 : i32, i32
  }
  func.func @transform_5(%arg0: i32, %arg1: i32) -> (i32, i32) {
    %c0_i32 = arith.constant 0 : i32
    %c0_i32_0 = arith.constant 0 : i32
    return %arg0, %c0_i32 : i32, i32
  }
}

</mosaic_0001>

<bundles_post_ra>
// kernel: feed_forward.1
= control target key start
LH: loop header
LB: loop body
LE: loop exit
PB: predicated region body
PF: predicated region fallthrough
CT: control target
= control target key end

     0   :  { %v549_v2 = vmov 0   ;;  %s700_s0 = inlined_call_operand.vmem [shape: bf16[16,128], index: 0, kind: input, shape index: {}]   ;;  %s701_s1 = inlined_call_operand.vmem [shape: bf16[128,256], index: 1, kind: input, shape index: {}]   ;;  %s702_s2 = inlined_call_operand.vmem [shape: f32[1,256], index: 2, kind: input, shape index: {}]   ;;  %s703_s3 = inlined_call_operand.vmem [shape: bf16[256,128], index: 3, kind: input, shape index: {}]   ;;  %s704_s4 = inlined_call_operand.vmem [shape: f32[1,128], index: 4, kind: input, shape index: {}]   ;;  %s705_s5 = inlined_call_operand.hbm [shape: f32[16,128], index: 5, kind: output, shape index: {}]  }
   0x1   :  { %v476_v0 = vld [vmem:[%s701_s1 + $0x4] ss:$8 sps:$4 sm:$0xff]   ;;  %v478_v1 = vld [vmem:[%s701_s1] ss:$8 sps:$4 sm:$0xff]   ;;  %176 = vmatprep.mubr.bf16.mxu0 %v549_v2  ;;  %v479_v3 = vld [vmem:[%s701_s1 + $0x14] ss:$8 sps:$4 sm:$0xff]  }
   0x2   :  { %144 = vmatprep.subr.bf16.mxu0 %v476_v0  ;;  %v481_v4 = vld [vmem:[%s701_s1 + $0x10] ss:$8 sps:$4 sm:$0xff]   ;;  %v482_v5 = vld [vmem:[%s701_s1 + $0x24] ss:$8 sps:$4 sm:$0xff]   ;;  %v484_v6 = vld [vmem:[%s701_s1 + $0x20] ss:$8 sps:$4 sm:$0xff]  }
   0x3   :  { %145 = vmatpush1.bf16.msra.mxu0 %v478_v1  ;;  %v485_v7 = vld [vmem:[%s701_s1 + $0x34] ss:$8 sps:$4 sm:$0xff]   ;;  %v487_v8 = vld [vmem:[%s701_s1 + $0x30] ss:$8 sps:$4 sm:$0xff]   ;;  %v488_v9 = vld [vmem:[%s701_s1 + $0x44] ss:$8 sps:$4 sm:$0xff]  }
   0x4   :  { %146 = vmatprep.subr.bf16.mxu0 %v479_v3  ;;  %v501_v10 = vld [vmem:[%s703_s3 + $0x40] sm:$0xff]   ;;  %v503_v13 = vld [vmem:[%s703_s3 + $0x48] sm:$0xff]   ;;  %v491_v14 = vld [vmem:[%s701_s1 + $0x54] ss:$8 sps:$4 sm:$0xff]  }
   0x5   :  { %v490_v11 = vld [vmem:[%s701_s1 + $0x40] ss:$8 sps:$4 sm:$0xff]   ;;  %450 = vmatprep.subr.bf16.mxu1 %v501_v10  ;;  %v493_v16 = vld [vmem:[%s701_s1 + $0x50] ss:$8 sps:$4 sm:$0xff]   ;;  %v494_v17 = vld [vmem:[%s701_s1 + $0x64] ss:$8 sps:$4 sm:$0xff]  }
   0x6   :  { %v502_v12 = vld [vmem:[%s703_s3] sm:$0xff]   ;;  %v504_v15 = vld [vmem:[%s703_s3 + $0x8] sm:$0xff]   ;;  %v497_v19 = vld [vmem:[%s701_s1 + $0x74] ss:$8 sps:$4 sm:$0xff]  }
   0x7   :  { %147 = vmatpush1.bf16.msra.mxu0 %v481_v4  ;;  %451 = vmatpush3.bf16.msra.mxu1 %v502_v12  ;;  %v496_v18 = vld [vmem:[%s701_s1 + $0x60] ss:$8 sps:$4 sm:$0xff]  }
   0x8   :  { %148 = vmatprep.subr.bf16.mxu0 %v482_v5  ;;  %452 = vmatprep.subr.bf16.mxu1 %v503_v13 }
   0xb   :  { %149 = vmatpush1.bf16.msra.mxu0 %v484_v6  ;;  %453 = vmatpush3.bf16.msra.mxu1 %v504_v15 }
   0xc   :  { %150 = vmatprep.subr.bf16.mxu0 %v485_v7 }
   0xf   :  { %151 = vmatpush1.bf16.msra.mxu0 %v487_v8 }
  0x10   :  { %152 = vmatprep.subr.bf16.mxu0 %v488_v9 }
  0x13   :  { %153 = vmatpush1.bf16.msra.mxu0 %v490_v11 }
  0x14   :  { %154 = vmatprep.subr.bf16.mxu0 %v491_v14 }
  0x17   :  { %155 = vmatpush1.bf16.msra.mxu0 %v493_v16 }
  0x18   :  { %156 = vmatprep.subr.bf16.mxu0 %v494_v17 }
  0x19   :  { %10 = vsyncpa [#allocation4], 0  ;;  %v499_v20 = vld [vmem:[%s701_s1 + $0x70] ss:$8 sps:$4 sm:$0xff]   ;;  %v500_v21 = vld [vmem:[%s700_s0] sm:$0xff]   ;;  %v48_v34 = vlaneseq  ;;  %s550_s9 = smov [#allocation3]  }
  0x1a   :  { %v505_v22 = vld [vmem:[%s703_s3 + $0x50] sm:$0xff]   ;;  %v507_v24 = vld [vmem:[%s703_s3 + $0x58] sm:$0xff]   ;;  %v509_v26 = vld [vmem:[%s703_s3 + $0x60] sm:$0xff]   ;;  %s405_s10 = sshll.u32 %s550_s9, 4  ;;  %s406_s10 = int_to_ptr.vmem [resolvable:$true] %s405_s10 }
  0x1b   :  { %157 = vmatpush1.bf16.msra.mxu0 %v496_v18  ;;  %v506_v23 = vld [vmem:[%s703_s3 + $0x10] sm:$0xff]   ;;  %454 = vmatprep.subr.bf16.mxu1 %v505_v22  ;;  %v508_v25 = vld [vmem:[%s703_s3 + $0x18] sm:$0xff]   ;;  %v510_v27 = vld [vmem:[%s703_s3 + $0x20] sm:$0xff]   ;;  %v49_v35 = vshrl.u32 %v48_v34, 7  ;;  %s525_s11 = scalar_lea.vmem %s406_s10, 256  ;;  %p530_p1 = scmp.lt.s32.totalorder %s406_s10, %s406_s10 }
  0x1c   :  { %158 = vmatprep.subr.bf16.mxu0 %v497_v19  ;;  %455 = vmatpush3.bf16.msra.mxu1 %v506_v23  ;;  %v511_v28 = vld [vmem:[%s703_s3 + $0x68] sm:$0xff]   ;;  %v513_v30 = vld [vmem:[%s703_s3 + $0x70] sm:$0xff]   ;;  %v515_v32 = vld [vmem:[%s703_s3 + $0x78] sm:$0xff]   ;;  %p526_p0 = scmp.ne.s32.totalorder %s406_s10, %s525_s11  ;;  %p531_p2 = scmp.lt.s32.totalorder %s525_s11, %s525_s11 }
  0x1d   :  { %456 = vmatprep.subr.bf16.mxu1 %v507_v24  ;;  %v512_v29 = vld [vmem:[%s703_s3 + $0x28] sm:$0xff]   ;;  %v514_v31 = vld [vmem:[%s703_s3 + $0x30] sm:$0xff]   ;;  %v516_v33 = vld [vmem:[%s703_s3 + $0x38] sm:$0xff]   ;;  %v50_v36 = vsub.s32 0, %v49_v35  ;;  %v54_v38 = vsub.s32 1, %v49_v35 }
  0x1e   :  { %v46_v37 = vld [vmem:[%s702_s2] sm:$0x3]  ;;  %p532_p3 = por %p531_p2, %p530_p1 }
  0x1f   :  { %159 = vmatpush1.bf16.msra.mxu0 %v499_v20  ;;  %v51_v39 = vrot.slane %v46_v37, %v50_v36  ;;  %v55_v40 = vrot.slane %v46_v37, %v54_v38  ;;  %v449_v9 = vld [vmem:[%s704_s4] ss:$0 sm:$0xff] }
  0x20   :  { %457 = vmatpush3.bf16.msra.mxu1 %v508_v25  ;;  %p533_p4 = pnand %p532_p3, %p526_p0 }
  0x21   :  { %458 = vmatprep.subr.bf16.mxu1 %v509_v26 }
  0x22   :  { %177 = vmatmul.mubr.bf16.vlgmr.msra.gmra.mrb[0].mxu0 %v500_v21 }
  0x24   :  { %459 = vmatpush3.bf16.msra.mxu1 %v510_v27 }
  0x25   :  { %460 = vmatprep.subr.bf16.mxu1 %v511_v28 }
  0x28   :  { %461 = vmatpush3.bf16.msra.mxu1 %v512_v29 }
  0x29   :  { %462 = vmatprep.subr.bf16.mxu1 %v513_v30 }
  0x2c   :  { %463 = vmatpush3.bf16.msra.mxu1 %v514_v31 }
  0x2d   :  { %464 = vmatprep.subr.bf16.mxu1 %v515_v32 }
  0x30   :  { %465 = vmatpush3.bf16.msra.mxu1 %v516_v33 }
  0xf5   :  { %v178_v41 = vpop.f32.mrb[0].mxu0 }
  0xf6   :  { %v179_v42 = vadd.f32 %v178_v41, %v51_v39  ;;  %v180_v43 = vpop.f32.mrb[1].mxu0 }
  0xf7   :  { %v181_v44 = vadd.f32 %v180_v43, %v55_v40  ;;  %v182_v45 = vpop.f32.mrb[2].mxu0 }
  0xf8   :  { %v191_v46 = vmul.f32 0.70710677, %v179_v42  ;;  %v183_v47 = vadd.f32 %v182_v45, %v51_v39  ;;  %v184_v48 = vpop.f32.mrb[3].mxu0  ;;  %v187_v59 = vmul.f32 0.5, %v179_v42 }
  0xf9   :  { %v192_v49 = vmul.f32 0.70710677, %v181_v44  ;;  %v185_v50 = vadd.f32 %v184_v48, %v55_v40  ;;  %v188_v62 = vmul.f32 0.5, %v181_v44 }
  0xfa   :  { %517 = verf.f32 %v191_v46  ;;  %v193_v51 = vmul.f32 0.70710677, %v183_v47  ;;  %v189_v60 = vmul.f32 0.5, %v183_v47 }
  0xfb   :  { %519 = verf.f32 %v192_v49  ;;  %v194_v52 = vmul.f32 0.70710677, %v185_v50  ;;  %v190_v63 = vmul.f32 0.5, %v185_v50 }
  0xfc   :  { %521 = verf.f32 %v193_v51 }
  0xfd   :  { %523 = verf.f32 %v194_v52 }
 0x104   :  { %v518_v53 = vpop.eup %517 }
 0x105   :  { %v520_v54 = vpop.eup %519  ;;  %v199_v55 = vadd.f32 1.0, %v518_v53 }
 0x106   :  { %v522_v56 = vpop.eup %521  ;;  %v200_v57 = vadd.f32 1.0, %v520_v54 }
 0x107   :  { %v524_v58 = vpop.eup %523  ;;  %v201_v61 = vadd.f32 1.0, %v522_v56  ;;  %v203_v1 = vmul.f32 %v199_v55, %v187_v59 }
 0x108   :  { %v202_v0 = vadd.f32 1.0, %v524_v58  ;;  %v204_v3 = vmul.f32 %v200_v57, %v188_v62 }
 0x109   :  { %v205_v2 = vmul.f32 %v201_v61, %v189_v60 }
 0x10a   :  { %v206_v4 = vmul.f32 %v202_v0, %v190_v63 }
 0x10b   :  { %v209_v5 = vpack.c.bf16 %v205_v2, %v203_v1 }
 0x10c   :  { %v210_v6 = vpack.c.bf16 %v206_v4, %v204_v3 }
 0x10e   :  { %371 = vmatprep.mubr.bf16.mxu1 %v210_v6 }
 0x10f   :  { %372 = vmatmul.mubr.bf16.vlgmr.msra.gmra.mrb[0].mxu1 %v209_v5 }
 0x1e2   :  { %v466_v7 = vpop.f32.mrb[0].mxu1 }
 0x1e3   :  { %v467_v8 = vpop.f32.mrb[1].mxu1 }
 0x1e4   :  { %v468_v10 = vadd.f32 %v467_v8, %v466_v7  ;;  %v469_v11 = vpop.f32.mrb[2].mxu1 }
 0x1e5   :  { %v470_v12 = vpop.f32.mrb[3].mxu1 }
 0x1e6   :  { %v396_v13 = vadd.f32 %v468_v10, %v449_v9  ;;  %v471_v14 = vadd.f32 %v470_v12, %v469_v11 }
 0x1e8   :  { %398 = vst [vmem:[#allocation3] sm:$0xff] %v396_v13  ;;  %v397_v15 = vadd.f32 %v471_v14, %v449_v9 }
 0x1ea   :  { %399 = vst [vmem:[#allocation3 + $0x8] sm:$0xff] %v397_v15 }
 0x1eb   :  { %536 = shalt.err (!%p533_p4)
}
 0x1ec   :  { %s537_s13 = scalar_lea.hbm %s705_s5, 256 }
 0x1ed   :  { %p538_p5 = scmp.ne.s32.totalorder %s705_s5, %s537_s13  ;;  %p541_p6 = scmp.lt.u32.totalorder %s537_s13, %s705_s5 }
 0x1ef   :  { %p543_p7 = pnand %p541_p6, %p538_p5 }
 0x1f1   :  { %546 = shalt.err (!%p543_p7)
}
 0x1f2   :  { %s551_s0 = smov 128   ;;  %s552_s17 = smov 8  }
 0x1f3   :  { %411 = dma.vmem_to_hbm [thread:$0]  %s406_s10, 256, %s705_s5, [#allocation4], %s551_s0, %s551_s0, %s552_s17  }
 0x1f4   :  { %547 = dma.done.wait [#allocation4], 256  }
 0x1f5   :  { %548 = vsyncadd [#allocation4], 4294967040 }
 0x1f6   :  { %415 = vsyncpa [#allocation4], 1 }

</bundles_post_ra>
